<compile_context>
chip_gen: v5e
topology: v5e:2x2
jax: 0.10.0
libtpu: 0.0.40
codegen_flags: <defaults>
</compile_context>

<pallas_src>
import jax
import jax.numpy as jnp
from jax.experimental import pallas as pl
from jax.experimental.pallas import tpu as pltpu


def _make_fused_kernel(stage_dims, acts):
    """Builds the fused multi-stage kernel.

    stage_dims: tuple of (hin, win, cin, cout) per stage.
    acts:       tuple of 'relu' / 'tanh' per stage.
    Kernel args: x_ref, (m_ref, b_ref) per stage, o_ref.
    """

    def kernel(x_ref, *refs):
        o_ref = refs[-1]
        a = x_ref[0]                                       # (H0, W0*C0) bf16
        y = None
        for s, (hin, win, cin, cout) in enumerate(stage_dims):
            m_ref = refs[2 * s]                            # (9, win*cin, wo*cout) bf16
            b_ref = refs[2 * s + 1]                        # (1, wo*cout) f32
            ho = (hin + 1) // 2
            wo = (win + 1) // 2
            oy = jax.lax.broadcasted_iota(jnp.int32, (ho, hin), 0)
            r = jax.lax.broadcasted_iota(jnp.int32, (ho, hin), 1)
            acc = jnp.zeros((ho, wo * cout), jnp.float32)
            for kh in range(3):
                # 0/1 row-gather matrix: output row oy reads input row
                # 2*oy + kh - 1; out-of-range rows match nothing -> zero pad.
                g = jnp.where(r == 2 * oy + (kh - 1), 1.0, 0.0).astype(jnp.bfloat16)
                rows = jnp.dot(g, a, preferred_element_type=jnp.float32)
                rows = rows.astype(jnp.bfloat16)           # (ho, win*cin), exact copy
                for kw in range(3):
                    # Column tap + conv weight + BN scale are folded into m_ref[t].
                    acc = acc + jnp.dot(rows, m_ref[kh * 3 + kw],
                                        preferred_element_type=jnp.float32)
            y = acc + b_ref[...]                           # folded BN bias
            y = jnp.maximum(y, 0.0) if acts[s] == "relu" else jnp.tanh(y)
            a = y.astype(jnp.bfloat16)                     # feeds the next stage (stays in VMEM/vregs)
        o_ref[0] = y.astype(o_ref.dtype)

    return kernel


def downsample_forward(x, params):
    """x: (N, H, W, C0) f32; params: list of (w(3,3,ci,co), scale(co), bias(co), act)."""
    N, H, W, C0 = x.shape
    stage_dims, acts, op_inputs, extra_specs = [], [], [], []
    hin, win, cin = H, W, C0
    for (w, scale, bias, act) in params:
        kh_, kw_, wcin, cout = w.shape
        assert (kh_, kw_, wcin) == (3, 3, cin)
        ho, wo = (hin + 1) // 2, (win + 1) // 2
        w_s = w * scale[None, None, None, :]               # fold BN scale into weights
        # M[t, c*cin + ci, ox*cout + co] = (c == 2*ox + kw - 1) * w_s[kh, kw, ci, co]
        c_idx = jnp.arange(win)
        ox_idx = jnp.arange(wo)
        m_taps = []
        for ikh in range(3):
            for ikw in range(3):
                sel = (c_idx[:, None] == 2 * ox_idx[None, :] + (ikw - 1)).astype(jnp.float32)
                blk = jnp.einsum("cx,io->cixo", sel, w_s[ikh, ikw])
                m_taps.append(blk.reshape(win * cin, wo * cout))
        m_all = jnp.stack(m_taps, axis=0).astype(jnp.bfloat16)     # (9, win*cin, wo*cout)
        b_big = jnp.tile(bias, wo).reshape(1, wo * cout).astype(jnp.float32)

        stage_dims.append((hin, win, cin, cout))
        acts.append(act)
        op_inputs += [m_all, b_big]
        extra_specs += [
            pl.BlockSpec((9, win * cin, wo * cout), lambda b: (0, 0, 0)),
            pl.BlockSpec((1, wo * cout), lambda b: (0, 0)),
        ]
        hin, win, cin = ho, wo, cout
    ho_f, wo_f, c_f = hin, win, cin

    x_in = x.reshape(N, H, W * C0).astype(jnp.bfloat16)    # compact activation slab (no im2col)
    kernel = _make_fused_kernel(tuple(stage_dims), tuple(acts))

    out = pl.pallas_call(
        kernel,
        out_shape=jax.ShapeDtypeStruct((N, ho_f, wo_f * c_f), jnp.float32),
        grid_spec=pltpu.PrefetchScalarGridSpec(
            num_scalar_prefetch=0,
            grid=(N,),
            in_specs=[pl.BlockSpec((1, H, W * C0), lambda b: (b, 0, 0))] + extra_specs,
            out_specs=pl.BlockSpec((1, ho_f, wo_f * c_f), lambda b: (b, 0, 0)),
        ),
        compiler_params=pltpu.CompilerParams(
            dimension_semantics=("parallel",)),
    )(x_in, *op_inputs)
    return out.reshape(N, ho_f, wo_f, c_f)


def init_downsample_params(key, num_channels, in_res, out_res):
    """Deterministic synthetic parameters matching DownsampleModule.__init__."""
    inp_chan = num_channels[in_res]
    out_chan = num_channels[out_res]
    level_diff = out_res - in_res
    eps = 1e-5
    params = []
    for k in range(level_diff):
        cin = inp_chan
        cout = out_chan if k == level_diff - 1 else inp_chan
        key, kw_, kg, kb, km, kv = jax.random.split(key, 6)
        w = 0.1 * jax.random.normal(kw_, (3, 3, cin, cout), jnp.float32)
        gamma = 1.0 + 0.1 * jax.random.normal(kg, (cout,), jnp.float32)
        beta = 0.1 * jax.random.normal(kb, (cout,), jnp.float32)
        rmean = 0.05 * jax.random.normal(km, (cout,), jnp.float32)
        rvar = 0.5 + 0.1 * jnp.abs(jax.random.normal(kv, (cout,), jnp.float32))
        scale = gamma / jnp.sqrt(rvar + eps)     # fold BN into scale/bias
        bias = beta - rmean * scale
        act = "tanh" if k == level_diff - 1 else "relu"
        params.append((w, scale, bias, act))
    return params


def _ref_forward(x, params):
    """Pure-JAX f32 reference (same math) for correctness checking."""
    for (w, scale, bias, act) in params:
        y = jax.lax.conv_general_dilated(
            x, w, window_strides=(2, 2), padding=((1, 1), (1, 1)),
            dimension_numbers=("NHWC", "HWIO", "NHWC"),
            precision=jax.lax.Precision.HIGHEST)
        y = y * scale + bias
        x = jnp.maximum(y, 0.0) if act == "relu" else jnp.tanh(y)
    return x


if __name__ == "__main__":
    key = jax.random.PRNGKey(0)
    kx, kp = jax.random.split(key)

    # DownsampleModule(num_channels=[4, 8, 16], in_res=0, out_res=2)
    # -> level_diff = 2 stages: conv 4->4 (+BN+ReLU), conv 4->16 (+BN+Tanh),
    #    spatial 16 -> 8 -> 4.
    num_channels = [4, 8, 16]
    in_res, out_res = 0, 2
    N, H, W = 2, 16, 16

    x = jax.random.normal(kx, (N, H, W, num_channels[in_res]), jnp.float32)
    params = init_downsample_params(kp, num_channels, in_res, out_res)

    out = downsample_forward(x, params)
    out = jax.block_until_ready(out)

    assert out.shape == (N, H // 4, W // 4, num_channels[out_res]), out.shape
    ref = _ref_forward(x, params)
    # bf16 GEMM operands with f32 accumulation -> small mismatch vs f32 HIGHEST ref.
    assert jnp.allclose(out, ref, atol=2e-2, rtol=2e-2), \
        float(jnp.max(jnp.abs(out - ref)))

    print("KERNEL_OK")
</pallas_src>

<mosaic_0001>
module attributes {stable_mosaic.version = 11 : i64} {
  func.func @kernel(%arg0: i32, %arg1: memref<1x16x64xbf16, #tpu.memory_space<vmem>>, %arg2: memref<9x64x32xbf16, #tpu.memory_space<vmem>>, %arg3: memref<1x32xf32, #tpu.memory_space<vmem>>, %arg4: memref<9x32x64xbf16, #tpu.memory_space<vmem>>, %arg5: memref<1x64xf32, #tpu.memory_space<vmem>>, %arg6: memref<1x4x64xf32, #tpu.memory_space<vmem>>) attributes {dimension_semantics = [#tpu.dimension_semantics<parallel>], iteration_bounds = array<i64: 2>, scalar_prefetch = 0 : i64, scratch_operands = 0 : i64, tpu.core_type = #tpu.core_type<tc>, window_params = [{transform_indices = @transform_0, window_bounds = array<i64: 1, 16, 64>}, {pipeline_mode = #tpu.pipeline_mode<synchronous>, transform_indices = @transform_1, window_bounds = array<i64: 9, 64, 32>}, {pipeline_mode = #tpu.pipeline_mode<synchronous>, transform_indices = @transform_2, window_bounds = array<i64: 1, 32>}, {pipeline_mode = #tpu.pipeline_mode<synchronous>, transform_indices = @transform_3, window_bounds = array<i64: 9, 32, 64>}, {pipeline_mode = #tpu.pipeline_mode<synchronous>, transform_indices = @transform_4, window_bounds = array<i64: 1, 64>}, {transform_indices = @transform_5, window_bounds = array<i64: 1, 4, 64>}]} {
    %c0 = arith.constant 0 : index
    %c0_0 = arith.constant 0 : index
    %c0_1 = arith.constant 0 : index
    %0 = vector.load %arg1[%c0, %c0_0, %c0_1] : memref<1x16x64xbf16, #tpu.memory_space<vmem>>, vector<1x16x64xbf16>
    %1 = vector.shape_cast %0 : vector<1x16x64xbf16> to vector<16x64xbf16>
    %2 = tpu.iota {dimensions = array<i32: 0>} : vector<8x16xi32>
    %3 = tpu.iota {dimensions = array<i32: 1>} : vector<8x16xi32>
    %cst = arith.constant 0.000000e+00 : f32
    %4 = vector.broadcast %cst : f32 to vector<8x32xf32>
    %c2_i32 = arith.constant 2 : i32
    %5 = vector.broadcast %c2_i32 : i32 to vector<8x16xi32>
    %6 = arith.muli %5, %2 : vector<8x16xi32>
    %c-1_i32 = arith.constant -1 : i32
    %7 = vector.broadcast %c-1_i32 : i32 to vector<8x16xi32>
    %8 = arith.addi %6, %7 : vector<8x16xi32>
    %9 = arith.cmpi eq, %3, %8 : vector<8x16xi32>
    %cst_2 = arith.constant 1.000000e+00 : f32
    %cst_3 = arith.constant 0.000000e+00 : f32
    %10 = vector.broadcast %cst_2 : f32 to vector<8x16xf32>
    %11 = vector.broadcast %cst_3 : f32 to vector<8x16xf32>
    %12 = arith.select %9, %10, %11 : vector<8x16xi1>, vector<8x16xf32>
    %13 = arith.truncf %12 : vector<8x16xf32> to vector<8x16xbf16>
    %cst_4 = arith.constant dense<0.000000e+00> : vector<8x64xf32>
    %14 = tpu.matmul %13, %1, %cst_4 {dimension_numbers = #tpu.dot_dimension_numbers<[1], [0], [0], [1], [0, 0, 1, 1], [], []>} : vector<8x16xbf16>, vector<16x64xbf16>, vector<8x64xf32> -> vector<8x64xf32>
    %15 = arith.truncf %14 : vector<8x64xf32> to vector<8x64xbf16>
    %c0_5 = arith.constant 0 : index
    %c0_6 = arith.constant 0 : index
    %c0_7 = arith.constant 0 : index
    %16 = vector.load %arg2[%c0_5, %c0_6, %c0_7] : memref<9x64x32xbf16, #tpu.memory_space<vmem>>, vector<1x64x32xbf16>
    %17 = vector.shape_cast %16 : vector<1x64x32xbf16> to vector<64x32xbf16>
    %cst_8 = arith.constant dense<0.000000e+00> : vector<8x32xf32>
    %18 = tpu.matmul %15, %17, %cst_8 {dimension_numbers = #tpu.dot_dimension_numbers<[1], [0], [0], [1], [0, 0, 1, 1], [], []>} : vector<8x64xbf16>, vector<64x32xbf16>, vector<8x32xf32> -> vector<8x32xf32>
    %19 = arith.addf %4, %18 : vector<8x32xf32>
    %c1 = arith.constant 1 : index
    %c0_9 = arith.constant 0 : index
    %c0_10 = arith.constant 0 : index
    %20 = vector.load %arg2[%c1, %c0_9, %c0_10] : memref<9x64x32xbf16, #tpu.memory_space<vmem>>, vector<1x64x32xbf16>
    %21 = vector.shape_cast %20 : vector<1x64x32xbf16> to vector<64x32xbf16>
    %cst_11 = arith.constant dense<0.000000e+00> : vector<8x32xf32>
    %22 = tpu.matmul %15, %21, %cst_11 {dimension_numbers = #tpu.dot_dimension_numbers<[1], [0], [0], [1], [0, 0, 1, 1], [], []>} : vector<8x64xbf16>, vector<64x32xbf16>, vector<8x32xf32> -> vector<8x32xf32>
    %23 = arith.addf %19, %22 : vector<8x32xf32>
    %c2 = arith.constant 2 : index
    %c0_12 = arith.constant 0 : index
    %c0_13 = arith.constant 0 : index
    %24 = vector.load %arg2[%c2, %c0_12, %c0_13] : memref<9x64x32xbf16, #tpu.memory_space<vmem>>, vector<1x64x32xbf16>
    %25 = vector.shape_cast %24 : vector<1x64x32xbf16> to vector<64x32xbf16>
    %cst_14 = arith.constant dense<0.000000e+00> : vector<8x32xf32>
    %26 = tpu.matmul %15, %25, %cst_14 {dimension_numbers = #tpu.dot_dimension_numbers<[1], [0], [0], [1], [0, 0, 1, 1], [], []>} : vector<8x64xbf16>, vector<64x32xbf16>, vector<8x32xf32> -> vector<8x32xf32>
    %27 = arith.addf %23, %26 : vector<8x32xf32>
    %c2_i32_15 = arith.constant 2 : i32
    %28 = vector.broadcast %c2_i32_15 : i32 to vector<8x16xi32>
    %29 = arith.muli %28, %2 : vector<8x16xi32>
    %c0_i32 = arith.constant 0 : i32
    %30 = vector.broadcast %c0_i32 : i32 to vector<8x16xi32>
    %31 = arith.addi %29, %30 : vector<8x16xi32>
    %32 = arith.cmpi eq, %3, %31 : vector<8x16xi32>
    %cst_16 = arith.constant 1.000000e+00 : f32
    %cst_17 = arith.constant 0.000000e+00 : f32
    %33 = vector.broadcast %cst_16 : f32 to vector<8x16xf32>
    %34 = vector.broadcast %cst_17 : f32 to vector<8x16xf32>
    %35 = arith.select %32, %33, %34 : vector<8x16xi1>, vector<8x16xf32>
    %36 = arith.truncf %35 : vector<8x16xf32> to vector<8x16xbf16>
    %cst_18 = arith.constant dense<0.000000e+00> : vector<8x64xf32>
    %37 = tpu.matmul %36, %1, %cst_18 {dimension_numbers = #tpu.dot_dimension_numbers<[1], [0], [0], [1], [0, 0, 1, 1], [], []>} : vector<8x16xbf16>, vector<16x64xbf16>, vector<8x64xf32> -> vector<8x64xf32>
    %38 = arith.truncf %37 : vector<8x64xf32> to vector<8x64xbf16>
    %c3 = arith.constant 3 : index
    %c0_19 = arith.constant 0 : index
    %c0_20 = arith.constant 0 : index
    %39 = vector.load %arg2[%c3, %c0_19, %c0_20] : memref<9x64x32xbf16, #tpu.memory_space<vmem>>, vector<1x64x32xbf16>
    %40 = vector.shape_cast %39 : vector<1x64x32xbf16> to vector<64x32xbf16>
    %cst_21 = arith.constant dense<0.000000e+00> : vector<8x32xf32>
    %41 = tpu.matmul %38, %40, %cst_21 {dimension_numbers = #tpu.dot_dimension_numbers<[1], [0], [0], [1], [0, 0, 1, 1], [], []>} : vector<8x64xbf16>, vector<64x32xbf16>, vector<8x32xf32> -> vector<8x32xf32>
    %42 = arith.addf %27, %41 : vector<8x32xf32>
    %c4 = arith.constant 4 : index
    %c0_22 = arith.constant 0 : index
    %c0_23 = arith.constant 0 : index
    %43 = vector.load %arg2[%c4, %c0_22, %c0_23] : memref<9x64x32xbf16, #tpu.memory_space<vmem>>, vector<1x64x32xbf16>
    %44 = vector.shape_cast %43 : vector<1x64x32xbf16> to vector<64x32xbf16>
    %cst_24 = arith.constant dense<0.000000e+00> : vector<8x32xf32>
    %45 = tpu.matmul %38, %44, %cst_24 {dimension_numbers = #tpu.dot_dimension_numbers<[1], [0], [0], [1], [0, 0, 1, 1], [], []>} : vector<8x64xbf16>, vector<64x32xbf16>, vector<8x32xf32> -> vector<8x32xf32>
    %46 = arith.addf %42, %45 : vector<8x32xf32>
    %c5 = arith.constant 5 : index
    %c0_25 = arith.constant 0 : index
    %c0_26 = arith.constant 0 : index
    %47 = vector.load %arg2[%c5, %c0_25, %c0_26] : memref<9x64x32xbf16, #tpu.memory_space<vmem>>, vector<1x64x32xbf16>
    %48 = vector.shape_cast %47 : vector<1x64x32xbf16> to vector<64x32xbf16>
    %cst_27 = arith.constant dense<0.000000e+00> : vector<8x32xf32>
    %49 = tpu.matmul %38, %48, %cst_27 {dimension_numbers = #tpu.dot_dimension_numbers<[1], [0], [0], [1], [0, 0, 1, 1], [], []>} : vector<8x64xbf16>, vector<64x32xbf16>, vector<8x32xf32> -> vector<8x32xf32>
    %50 = arith.addf %46, %49 : vector<8x32xf32>
    %c2_i32_28 = arith.constant 2 : i32
    %51 = vector.broadcast %c2_i32_28 : i32 to vector<8x16xi32>
    %52 = arith.muli %51, %2 : vector<8x16xi32>
    %c1_i32 = arith.constant 1 : i32
    %53 = vector.broadcast %c1_i32 : i32 to vector<8x16xi32>
    %54 = arith.addi %52, %53 : vector<8x16xi32>
    %55 = arith.cmpi eq, %3, %54 : vector<8x16xi32>
    %cst_29 = arith.constant 1.000000e+00 : f32
    %cst_30 = arith.constant 0.000000e+00 : f32
    %56 = vector.broadcast %cst_29 : f32 to vector<8x16xf32>
    %57 = vector.broadcast %cst_30 : f32 to vector<8x16xf32>
    %58 = arith.select %55, %56, %57 : vector<8x16xi1>, vector<8x16xf32>
    %59 = arith.truncf %58 : vector<8x16xf32> to vector<8x16xbf16>
    %cst_31 = arith.constant dense<0.000000e+00> : vector<8x64xf32>
    %60 = tpu.matmul %59, %1, %cst_31 {dimension_numbers = #tpu.dot_dimension_numbers<[1], [0], [0], [1], [0, 0, 1, 1], [], []>} : vector<8x16xbf16>, vector<16x64xbf16>, vector<8x64xf32> -> vector<8x64xf32>
    %61 = arith.truncf %60 : vector<8x64xf32> to vector<8x64xbf16>
    %c6 = arith.constant 6 : index
    %c0_32 = arith.constant 0 : index
    %c0_33 = arith.constant 0 : index
    %62 = vector.load %arg2[%c6, %c0_32, %c0_33] : memref<9x64x32xbf16, #tpu.memory_space<vmem>>, vector<1x64x32xbf16>
    %63 = vector.shape_cast %62 : vector<1x64x32xbf16> to vector<64x32xbf16>
    %cst_34 = arith.constant dense<0.000000e+00> : vector<8x32xf32>
    %64 = tpu.matmul %61, %63, %cst_34 {dimension_numbers = #tpu.dot_dimension_numbers<[1], [0], [0], [1], [0, 0, 1, 1], [], []>} : vector<8x64xbf16>, vector<64x32xbf16>, vector<8x32xf32> -> vector<8x32xf32>
    %65 = arith.addf %50, %64 : vector<8x32xf32>
    %c7 = arith.constant 7 : index
    %c0_35 = arith.constant 0 : index
    %c0_36 = arith.constant 0 : index
    %66 = vector.load %arg2[%c7, %c0_35, %c0_36] : memref<9x64x32xbf16, #tpu.memory_space<vmem>>, vector<1x64x32xbf16>
    %67 = vector.shape_cast %66 : vector<1x64x32xbf16> to vector<64x32xbf16>
    %cst_37 = arith.constant dense<0.000000e+00> : vector<8x32xf32>
    %68 = tpu.matmul %61, %67, %cst_37 {dimension_numbers = #tpu.dot_dimension_numbers<[1], [0], [0], [1], [0, 0, 1, 1], [], []>} : vector<8x64xbf16>, vector<64x32xbf16>, vector<8x32xf32> -> vector<8x32xf32>
    %69 = arith.addf %65, %68 : vector<8x32xf32>
    %c8 = arith.constant 8 : index
    %c0_38 = arith.constant 0 : index
    %c0_39 = arith.constant 0 : index
    %70 = vector.load %arg2[%c8, %c0_38, %c0_39] : memref<9x64x32xbf16, #tpu.memory_space<vmem>>, vector<1x64x32xbf16>
    %71 = vector.shape_cast %70 : vector<1x64x32xbf16> to vector<64x32xbf16>
    %cst_40 = arith.constant dense<0.000000e+00> : vector<8x32xf32>
    %72 = tpu.matmul %61, %71, %cst_40 {dimension_numbers = #tpu.dot_dimension_numbers<[1], [0], [0], [1], [0, 0, 1, 1], [], []>} : vector<8x64xbf16>, vector<64x32xbf16>, vector<8x32xf32> -> vector<8x32xf32>
    %73 = arith.addf %69, %72 : vector<8x32xf32>
    %c0_41 = arith.constant 0 : index
    %c0_42 = arith.constant 0 : index
    %74 = vector.load %arg3[%c0_41, %c0_42] : memref<1x32xf32, #tpu.memory_space<vmem>>, vector<1x32xf32>
    %75 = vector.broadcast %74 : vector<1x32xf32> to vector<8x32xf32>
    %76 = arith.addf %73, %75 : vector<8x32xf32>
    %cst_43 = arith.constant 0.000000e+00 : f32
    %77 = vector.broadcast %cst_43 : f32 to vector<8x32xf32>
    %78 = arith.maximumf %76, %77 : vector<8x32xf32>
    %79 = arith.truncf %78 : vector<8x32xf32> to vector<8x32xbf16>
    %80 = tpu.iota {dimensions = array<i32: 0>} : vector<4x8xi32>
    %81 = tpu.iota {dimensions = array<i32: 1>} : vector<4x8xi32>
    %cst_44 = arith.constant 0.000000e+00 : f32
    %82 = vector.broadcast %cst_44 : f32 to vector<4x64xf32>
    %c2_i32_45 = arith.constant 2 : i32
    %83 = vector.broadcast %c2_i32_45 : i32 to vector<4x8xi32>
    %84 = arith.muli %83, %80 : vector<4x8xi32>
    %c-1_i32_46 = arith.constant -1 : i32
    %85 = vector.broadcast %c-1_i32_46 : i32 to vector<4x8xi32>
    %86 = arith.addi %84, %85 : vector<4x8xi32>
    %87 = arith.cmpi eq, %81, %86 : vector<4x8xi32>
    %cst_47 = arith.constant 1.000000e+00 : f32
    %cst_48 = arith.constant 0.000000e+00 : f32
    %88 = vector.broadcast %cst_47 : f32 to vector<4x8xf32>
    %89 = vector.broadcast %cst_48 : f32 to vector<4x8xf32>
    %90 = arith.select %87, %88, %89 : vector<4x8xi1>, vector<4x8xf32>
    %91 = arith.truncf %90 : vector<4x8xf32> to vector<4x8xbf16>
    %cst_49 = arith.constant dense<0.000000e+00> : vector<4x32xf32>
    %92 = tpu.matmul %91, %79, %cst_49 {dimension_numbers = #tpu.dot_dimension_numbers<[1], [0], [0], [1], [0, 0, 1, 1], [], []>} : vector<4x8xbf16>, vector<8x32xbf16>, vector<4x32xf32> -> vector<4x32xf32>
    %93 = arith.truncf %92 : vector<4x32xf32> to vector<4x32xbf16>
    %c0_50 = arith.constant 0 : index
    %c0_51 = arith.constant 0 : index
    %c0_52 = arith.constant 0 : index
    %94 = vector.load %arg4[%c0_50, %c0_51, %c0_52] : memref<9x32x64xbf16, #tpu.memory_space<vmem>>, vector<1x32x64xbf16>
    %95 = vector.shape_cast %94 : vector<1x32x64xbf16> to vector<32x64xbf16>
    %cst_53 = arith.constant dense<0.000000e+00> : vector<4x64xf32>
    %96 = tpu.matmul %93, %95, %cst_53 {dimension_numbers = #tpu.dot_dimension_numbers<[1], [0], [0], [1], [0, 0, 1, 1], [], []>} : vector<4x32xbf16>, vector<32x64xbf16>, vector<4x64xf32> -> vector<4x64xf32>
    %97 = arith.addf %82, %96 : vector<4x64xf32>
    %c1_54 = arith.constant 1 : index
    %c0_55 = arith.constant 0 : index
    %c0_56 = arith.constant 0 : index
    %98 = vector.load %arg4[%c1_54, %c0_55, %c0_56] : memref<9x32x64xbf16, #tpu.memory_space<vmem>>, vector<1x32x64xbf16>
    %99 = vector.shape_cast %98 : vector<1x32x64xbf16> to vector<32x64xbf16>
    %cst_57 = arith.constant dense<0.000000e+00> : vector<4x64xf32>
    %100 = tpu.matmul %93, %99, %cst_57 {dimension_numbers = #tpu.dot_dimension_numbers<[1], [0], [0], [1], [0, 0, 1, 1], [], []>} : vector<4x32xbf16>, vector<32x64xbf16>, vector<4x64xf32> -> vector<4x64xf32>
    %101 = arith.addf %97, %100 : vector<4x64xf32>
    %c2_58 = arith.constant 2 : index
    %c0_59 = arith.constant 0 : index
    %c0_60 = arith.constant 0 : index
    %102 = vector.load %arg4[%c2_58, %c0_59, %c0_60] : memref<9x32x64xbf16, #tpu.memory_space<vmem>>, vector<1x32x64xbf16>
    %103 = vector.shape_cast %102 : vector<1x32x64xbf16> to vector<32x64xbf16>
    %cst_61 = arith.constant dense<0.000000e+00> : vector<4x64xf32>
    %104 = tpu.matmul %93, %103, %cst_61 {dimension_numbers = #tpu.dot_dimension_numbers<[1], [0], [0], [1], [0, 0, 1, 1], [], []>} : vector<4x32xbf16>, vector<32x64xbf16>, vector<4x64xf32> -> vector<4x64xf32>
    %105 = arith.addf %101, %104 : vector<4x64xf32>
    %c2_i32_62 = arith.constant 2 : i32
    %106 = vector.broadcast %c2_i32_62 : i32 to vector<4x8xi32>
    %107 = arith.muli %106, %80 : vector<4x8xi32>
    %c0_i32_63 = arith.constant 0 : i32
    %108 = vector.broadcast %c0_i32_63 : i32 to vector<4x8xi32>
    %109 = arith.addi %107, %108 : vector<4x8xi32>
    %110 = arith.cmpi eq, %81, %109 : vector<4x8xi32>
    %cst_64 = arith.constant 1.000000e+00 : f32
    %cst_65 = arith.constant 0.000000e+00 : f32
    %111 = vector.broadcast %cst_64 : f32 to vector<4x8xf32>
    %112 = vector.broadcast %cst_65 : f32 to vector<4x8xf32>
    %113 = arith.select %110, %111, %112 : vector<4x8xi1>, vector<4x8xf32>
    %114 = arith.truncf %113 : vector<4x8xf32> to vector<4x8xbf16>
    %cst_66 = arith.constant dense<0.000000e+00> : vector<4x32xf32>
    %115 = tpu.matmul %114, %79, %cst_66 {dimension_numbers = #tpu.dot_dimension_numbers<[1], [0], [0], [1], [0, 0, 1, 1], [], []>} : vector<4x8xbf16>, vector<8x32xbf16>, vector<4x32xf32> -> vector<4x32xf32>
    %116 = arith.truncf %115 : vector<4x32xf32> to vector<4x32xbf16>
    %c3_67 = arith.constant 3 : index
    %c0_68 = arith.constant 0 : index
    %c0_69 = arith.constant 0 : index
    %117 = vector.load %arg4[%c3_67, %c0_68, %c0_69] : memref<9x32x64xbf16, #tpu.memory_space<vmem>>, vector<1x32x64xbf16>
    %118 = vector.shape_cast %117 : vector<1x32x64xbf16> to vector<32x64xbf16>
    %cst_70 = arith.constant dense<0.000000e+00> : vector<4x64xf32>
    %119 = tpu.matmul %116, %118, %cst_70 {dimension_numbers = #tpu.dot_dimension_numbers<[1], [0], [0], [1], [0, 0, 1, 1], [], []>} : vector<4x32xbf16>, vector<32x64xbf16>, vector<4x64xf32> -> vector<4x64xf32>
    %120 = arith.addf %105, %119 : vector<4x64xf32>
    %c4_71 = arith.constant 4 : index
    %c0_72 = arith.constant 0 : index
    %c0_73 = arith.constant 0 : index
    %121 = vector.load %arg4[%c4_71, %c0_72, %c0_73] : memref<9x32x64xbf16, #tpu.memory_space<vmem>>, vector<1x32x64xbf16>
    %122 = vector.shape_cast %121 : vector<1x32x64xbf16> to vector<32x64xbf16>
    %cst_74 = arith.constant dense<0.000000e+00> : vector<4x64xf32>
    %123 = tpu.matmul %116, %122, %cst_74 {dimension_numbers = #tpu.dot_dimension_numbers<[1], [0], [0], [1], [0, 0, 1, 1], [], []>} : vector<4x32xbf16>, vector<32x64xbf16>, vector<4x64xf32> -> vector<4x64xf32>
    %124 = arith.addf %120, %123 : vector<4x64xf32>
    %c5_75 = arith.constant 5 : index
    %c0_76 = arith.constant 0 : index
    %c0_77 = arith.constant 0 : index
    %125 = vector.load %arg4[%c5_75, %c0_76, %c0_77] : memref<9x32x64xbf16, #tpu.memory_space<vmem>>, vector<1x32x64xbf16>
    %126 = vector.shape_cast %125 : vector<1x32x64xbf16> to vector<32x64xbf16>
    %cst_78 = arith.constant dense<0.000000e+00> : vector<4x64xf32>
    %127 = tpu.matmul %116, %126, %cst_78 {dimension_numbers = #tpu.dot_dimension_numbers<[1], [0], [0], [1], [0, 0, 1, 1], [], []>} : vector<4x32xbf16>, vector<32x64xbf16>, vector<4x64xf32> -> vector<4x64xf32>
    %128 = arith.addf %124, %127 : vector<4x64xf32>
    %c2_i32_79 = arith.constant 2 : i32
    %129 = vector.broadcast %c2_i32_79 : i32 to vector<4x8xi32>
    %130 = arith.muli %129, %80 : vector<4x8xi32>
    %c1_i32_80 = arith.constant 1 : i32
    %131 = vector.broadcast %c1_i32_80 : i32 to vector<4x8xi32>
    %132 = arith.addi %130, %131 : vector<4x8xi32>
    %133 = arith.cmpi eq, %81, %132 : vector<4x8xi32>
    %cst_81 = arith.constant 1.000000e+00 : f32
    %cst_82 = arith.constant 0.000000e+00 : f32
    %134 = vector.broadcast %cst_81 : f32 to vector<4x8xf32>
    %135 = vector.broadcast %cst_82 : f32 to vector<4x8xf32>
    %136 = arith.select %133, %134, %135 : vector<4x8xi1>, vector<4x8xf32>
    %137 = arith.truncf %136 : vector<4x8xf32> to vector<4x8xbf16>
    %cst_83 = arith.constant dense<0.000000e+00> : vector<4x32xf32>
    %138 = tpu.matmul %137, %79, %cst_83 {dimension_numbers = #tpu.dot_dimension_numbers<[1], [0], [0], [1], [0, 0, 1, 1], [], []>} : vector<4x8xbf16>, vector<8x32xbf16>, vector<4x32xf32> -> vector<4x32xf32>
    %139 = arith.truncf %138 : vector<4x32xf32> to vector<4x32xbf16>
    %c6_84 = arith.constant 6 : index
    %c0_85 = arith.constant 0 : index
    %c0_86 = arith.constant 0 : index
    %140 = vector.load %arg4[%c6_84, %c0_85, %c0_86] : memref<9x32x64xbf16, #tpu.memory_space<vmem>>, vector<1x32x64xbf16>
    %141 = vector.shape_cast %140 : vector<1x32x64xbf16> to vector<32x64xbf16>
    %cst_87 = arith.constant dense<0.000000e+00> : vector<4x64xf32>
    %142 = tpu.matmul %139, %141, %cst_87 {dimension_numbers = #tpu.dot_dimension_numbers<[1], [0], [0], [1], [0, 0, 1, 1], [], []>} : vector<4x32xbf16>, vector<32x64xbf16>, vector<4x64xf32> -> vector<4x64xf32>
    %143 = arith.addf %128, %142 : vector<4x64xf32>
    %c7_88 = arith.constant 7 : index
    %c0_89 = arith.constant 0 : index
    %c0_90 = arith.constant 0 : index
    %144 = vector.load %arg4[%c7_88, %c0_89, %c0_90] : memref<9x32x64xbf16, #tpu.memory_space<vmem>>, vector<1x32x64xbf16>
    %145 = vector.shape_cast %144 : vector<1x32x64xbf16> to vector<32x64xbf16>
    %cst_91 = arith.constant dense<0.000000e+00> : vector<4x64xf32>
    %146 = tpu.matmul %139, %145, %cst_91 {dimension_numbers = #tpu.dot_dimension_numbers<[1], [0], [0], [1], [0, 0, 1, 1], [], []>} : vector<4x32xbf16>, vector<32x64xbf16>, vector<4x64xf32> -> vector<4x64xf32>
    %147 = arith.addf %143, %146 : vector<4x64xf32>
    %c8_92 = arith.constant 8 : index
    %c0_93 = arith.constant 0 : index
    %c0_94 = arith.constant 0 : index
    %148 = vector.load %arg4[%c8_92, %c0_93, %c0_94] : memref<9x32x64xbf16, #tpu.memory_space<vmem>>, vector<1x32x64xbf16>
    %149 = vector.shape_cast %148 : vector<1x32x64xbf16> to vector<32x64xbf16>
    %cst_95 = arith.constant dense<0.000000e+00> : vector<4x64xf32>
    %150 = tpu.matmul %139, %149, %cst_95 {dimension_numbers = #tpu.dot_dimension_numbers<[1], [0], [0], [1], [0, 0, 1, 1], [], []>} : vector<4x32xbf16>, vector<32x64xbf16>, vector<4x64xf32> -> vector<4x64xf32>
    %151 = arith.addf %147, %150 : vector<4x64xf32>
    %c0_96 = arith.constant 0 : index
    %c0_97 = arith.constant 0 : index
    %152 = vector.load %arg5[%c0_96, %c0_97] : memref<1x64xf32, #tpu.memory_space<vmem>>, vector<1x64xf32>
    %153 = vector.broadcast %152 : vector<1x64xf32> to vector<4x64xf32>
    %154 = arith.addf %151, %153 : vector<4x64xf32>
    %155 = math.tanh %154 : vector<4x64xf32>
    %c0_98 = arith.constant 0 : index
    %c0_99 = arith.constant 0 : index
    %c0_100 = arith.constant 0 : index
    %156 = vector.load %arg6[%c0_98, %c0_99, %c0_100] : memref<1x4x64xf32, #tpu.memory_space<vmem>>, vector<1x4x64xf32>
    %157 = vector.shape_cast %156 : vector<1x4x64xf32> to vector<4x64xf32>
    %158 = vector.shape_cast %155 : vector<4x64xf32> to vector<1x4x64xf32>
    tpu.vector_store %arg6[%c0_98, %c0_99, %c0_100], %158 {strides = array<i32>} : memref<1x4x64xf32, #tpu.memory_space<vmem>>, vector<1x4x64xf32>,
    return
  }
  func.func @transform_0(%arg0: i32) -> (i32, i32, i32) {
    %c0_i32 = arith.constant 0 : i32
    %c0_i32_0 = arith.constant 0 : i32
    %c0_i32_1 = arith.constant 0 : i32
    return %arg0, %c0_i32, %c0_i32_0 : i32, i32, i32
  }
  func.func @transform_1(%arg0: i32) -> (i32, i32, i32) {
    %c0_i32 = arith.constant 0 : i32
    %c0_i32_0 = arith.constant 0 : i32
    %c0_i32_1 = arith.constant 0 : i32
    %c0_i32_2 = arith.constant 0 : i32
    return %c0_i32, %c0_i32_0, %c0_i32_1 : i32, i32, i32
  }
  func.func @transform_2(%arg0: i32) -> (i32, i32) {
    %c0_i32 = arith.constant 0 : i32
    %c0_i32_0 = arith.constant 0 : i32
    %c0_i32_1 = arith.constant 0 : i32
    return %c0_i32, %c0_i32_0 : i32, i32
  }
  func.func @transform_3(%arg0: i32) -> (i32, i32, i32) {
    %c0_i32 = arith.constant 0 : i32
    %c0_i32_0 = arith.constant 0 : i32
    %c0_i32_1 = arith.constant 0 : i32
    %c0_i32_2 = arith.constant 0 : i32
    return %c0_i32, %c0_i32_0, %c0_i32_1 : i32, i32, i32
  }
  func.func @transform_4(%arg0: i32) -> (i32, i32) {
    %c0_i32 = arith.constant 0 : i32
    %c0_i32_0 = arith.constant 0 : i32
    %c0_i32_1 = arith.constant 0 : i32
    return %c0_i32, %c0_i32_0 : i32, i32
  }
  func.func @transform_5(%arg0: i32) -> (i32, i32, i32) {
    %c0_i32 = arith.constant 0 : i32
    %c0_i32_0 = arith.constant 0 : i32
    %c0_i32_1 = arith.constant 0 : i32
    return %arg0, %c0_i32, %c0_i32_0 : i32, i32, i32
  }
}

</mosaic_0001>

<bundles_post_ra>
// kernel: tpu_custom_call.1
= control target key start
LH: loop header
LB: loop body
LE: loop exit
PB: predicated region body
PF: predicated region fallthrough
CT: control target
= control target key end

     0   :  { %10 = vsyncpa [#allocation3], 0  ;;  %s1991_s0 = inlined_call_operand.vmem [shape: bf16[2,16,64], index: 0, kind: input, shape index: {}]   ;;  %s1992_s1 = inlined_call_operand.vmem [shape: bf16[9,64,32], index: 1, kind: input, shape index: {}]   ;;  %s1993_s2 = inlined_call_operand.vmem [shape: f32[1,32], index: 2, kind: input, shape index: {}]   ;;  %s1994_s3 = inlined_call_operand.vmem [shape: bf16[9,32,64], index: 3, kind: input, shape index: {}]   ;;  %s1995_s4 = inlined_call_operand.vmem [shape: f32[1,64], index: 4, kind: input, shape index: {}]   ;;  %s1996_s5 = inlined_call_operand.hbm [shape: f32[2,4,64], index: 5, kind: output, shape index: {}]  }
   0x1   :  { %12 = vsyncpa [#allocation3 + $0x1], 0  ;;  %s1705_s18 = smov 0   ;;  %s1707_s19 = smov 0  }
   0x2   :  { %s1709_s20 = smov 0   ;;  %s1711_s21 = smov 0  }
   0x3 LB: > { %s1726_s22 = sadd.s32 4294967295, %s1672_s21   ;;  %s1159_s23 = sadd.s32 4294967294, %s1672_s21   ;;  %s1672_s21 = sphi %s1711_s21, %s2002_s21   ;;  %s1668_s20 = sphi %s1709_s20, %s2001_s20   ;;  %s1664_s19 = sphi %s1707_s19, %s2000_s19   ;;  %s1660_s18 = sphi %s1705_s18, %s1999_s18  }
   0x4   : > { %s1730_s24 = sadd.s32 1, %s1672_s21   ;;  %s135_s25 = sadd.s32 1, %s1668_s20 }
   0x5   : > { %s132_s26 = ssub.s32 %s1672_s21, %s1730_s24  ;;  %p145_p0 = scmp.ne.s32.totalorder %s1668_s20, %s1664_s19 }
   0x6   : > { %p133_p1 = scmp.eq.s32.totalorder %s132_s26, 0  ;;  %p146_p2 = scmp.eq.s32.totalorder %s1726_s22, 1 }
   0x7   : > { %p151_p3 = scmp.ne.s32.totalorder %s1664_s19, %s1660_s18  ;;  %p152_p4 = scmp.eq.s32.totalorder %s1159_s23, 1 }
   0x8   : > { %s1741_s27 = scalar_select %p133_p1, %s1668_s20, %s135_s25  }
   0x9   : > { %p1743_p5 = por %p146_p2, %p145_p0  ;;  %p1747_p6 = por %p152_p4, %p151_p3 }
   0xa   : > { %p1162_p7 = scmp.ge.s32.totalorder %s1672_s21, 1  ;;  %p190_p8 = scmp.lt.s32.totalorder %s1672_s21, 3 }
   0xc   : > { %p191_p9 = pnand %p1162_p7, %p190_p8 }
   0xd   : > { %p218_p10 = scmp.lt.s32.totalorder (!%p191_p9), %s1726_s22, 1  ;;  %s215_s8 = sand.u32 (!%p191_p9), 1, %s1664_s19  }
   0xe   : > { %194 = sbr.rel (%p191_p9) target bundleno = 645 (0x285), region = 40  ;;  %s1163_s11 = sshll.u32 (!%p191_p9), %s215_s8, 2 }
   0xf   : > { %s1507_s12 = sshll.u32 (!%p191_p9), %s1726_s22, 2  ;;  %s217_s16 = scalar_lea.vmem (!%p191_p9), [#allocation2], %s1163_s11 }
  0x10   : > { %s1095_s15 = scalar_lea.hbm (!%p191_p9), %s1996_s5, %s1507_s12  ;;  %s1097_s17 = sshll.u32 (!%p191_p9), %s217_s16, 4  ;;  %s1098_s17 = int_to_ptr.vmem [resolvable:$true] %s1097_s17 }
  0x11   : > { %s1099_s23 = sshll.u32 (!%p191_p9), %s1095_s15, 4  ;;  %s1085_s25 = scalar_lea.sflag (!%p191_p9), [#allocation3], %s215_s8  ;;  %s1100_s23 = int_to_ptr.hbm [resolvable:$true] %s1099_s23 }
  0x12   : > { %s1624_s26 = sshra.s32 (!%p191_p9), %s1100_s23, 4  ;;  %s1630_s7 = scalar_lea.hbm (!%p191_p9), %s1996_s5, 8  ;;  %s1625_s26 = int_to_ptr.hbm [resolvable:$true] %s1624_s26 }
  0x13   : > { %v226_v0 = vlaneseq  ;;  %s219_s30 = scalar_select %p218_p10, %s1726_s22, 1  ;;  %v1674_v6 = vmov 0.0   ;;  %vm241_vm1 = vcmask 130048   ;;  %v1519_v9 = vld [vmem:[%s1992_s1 + $0x38] sm:$0xff]  ;;  %v1518_v12 = vld [vmem:[%s1992_s1 + $0x30] sm:$0xff]  ;;  %v1517_v15 = vld [vmem:[%s1992_s1 + $0x28] sm:$0xff] }
  0x14   : > { %v1515_v10 = vld [vmem:[%s1992_s1 + $0x18] sm:$0xff]  ;;  %308 = vmatpush.bf16.msra.mxu1 %v1519_v9  ;;  %v1514_v13 = vld [vmem:[%s1992_s1 + $0x10] sm:$0xff]  ;;  %v1513_v16 = vld [vmem:[%s1992_s1 + $0x8] sm:$0xff]  ;;  %vm300_vm4 = vcmask 523264   ;;  %vm740_vm5 = vcmask 1043456   ;;  %vm737_vm6 = vcmask 64512   ;;  %p1631_p0 = scmp.lt.s32.totalorder %s1625_s26, %s1996_s5 }
  0x15   : > { %v227_v1 = vshrl.u32 %v226_v0, 7  ;;  %s1510_s6 = sshll.u32 %s219_s30, 3  ;;  %v229_v2 = vand.u32 127, %v226_v0  ;;  %v1523_v11 = vld [vmem:[%s1992_s1 + $0x58] sm:$0xff]  ;;  %345 = vmatpush.bf16.msra.mxu2 %v1515_v10  ;;  %v1522_v14 = vld [vmem:[%s1992_s1 + $0x50] sm:$0xff]  ;;  %v1521_v17 = vld [vmem:[%s1992_s1 + $0x48] sm:$0xff] }
  0x16   : > { %s222_s9 = scalar_lea.vmem %s1991_s0, %s1510_s6  ;;  %391 = vmatpush.bf16.msra.mxu3 %v1523_v11  ;;  %v1516_v23 = vld [vmem:[%s1992_s1 + $0x20] sm:$0xff]  ;;  %v1527_v26 = vld [vmem:[%s1992_s1 + $0x78] sm:$0xff]  ;;  %v1526_v29 = vld [vmem:[%s1992_s1 + $0x70] sm:$0xff]  ;;  %vm779_vm7 = vcmask 261120   ;;  %vm1082_vm8 = vcmask 519168   ;;  %s1626_s22 = scalar_lea.hbm %s1625_s26, 4 }
  0x17   : > { %v230_v3 = vmul.u32 2, %v227_v1  ;;  %v1511_v4 = vld [vmem:[%s222_s9] sm:$0xff]  ;;  %v1531_v27 = vld [vmem:[%s1992_s1 + $0x98] sm:$0xff]  ;;  %v1530_v30 = vld [vmem:[%s1992_s1 + $0x90] sm:$0xff]  ;;  %p1627_p11 = scmp.ne.s32.totalorder %s1625_s26, %s1626_s22  ;;  %p1632_p1 = scmp.lt.s32.totalorder %s1630_s7, %s1626_s22 }
  0x18   : > { %252 = vmatpush.bf16.msra.mxu0 %v1511_v4  ;;  %309 = vmatpush.bf16.msra.mxu1 %v1518_v12  ;;  %v1512_v24 = vld [vmem:[%s1992_s1] sm:$0xff]  ;;  %v1535_v28 = vld [vmem:[%s1992_s1 + $0xb8] sm:$0xff]  ;;  %v1534_v31 = vld [vmem:[%s1992_s1 + $0xb0] sm:$0xff] }
  0x19   : > { %v231_v5 = vadd.s32 4294967295, %v230_v3  ;;  %vm401_vm2 = vcmp.eq.s32.totalorder %v229_v2, %v230_v3  ;;  %346 = vmatpush.bf16.msra.mxu2 %v1514_v13  ;;  %v565_v20 = vadd.s32 1, %v230_v3  ;;  %v1520_v25 = vld [vmem:[%s1992_s1 + $0x40] sm:$0xff]  ;;  %v1525_v32 = vld [vmem:[%s1992_s1 + $0x68] sm:$0xff]  ;;  %v1539_v39 = vld [vmem:[%s1992_s1 + $0xd8] sm:$0xff]  ;;  %p1628_p12 = pnand %p1627_p11, %p1743_p5  ;;  %p1633_p2 = por %p1632_p1, %p1631_p0 }
  0x1a   : > { %392 = vmatpush.bf16.msra.mxu3 %v1522_v14  ;;  %v402_v18 = vsel %vm401_vm2, 1.0, %v1674_v6  ;;  %v1529_v33 = vld [vmem:[%s1992_s1 + $0x88] sm:$0xff]  ;;  %v1524_v35 = vld [vmem:[%s1992_s1 + $0x60] sm:$0xff]  ;;  %v1543_v41 = vld [vmem:[%s1992_s1 + $0xf8] sm:$0xff] }
  0x1b   : > { %vm232_vm0 = vcmp.eq.s32.totalorder %v229_v2, %v231_v5  ;;  %v1789_v19 = vpack.c.bf16 %v402_v18, %v402_v18  ;;  %vm566_vm3 = vcmp.eq.s32.totalorder %v229_v2, %v565_v20  ;;  %v1533_v34 = vld [vmem:[%s1992_s1 + $0xa8] sm:$0xff]  ;;  %v1528_v36 = vld [vmem:[%s1992_s1 + $0x80] sm:$0xff]  ;;  %v1547_v42 = vld [vmem:[%s1992_s1 + $0x118] sm:$0xff]  ;;  %p1629_p13 = pneg %p1628_p12 }
  0x1c   : > { %v233_v7 = vsel %vm232_vm0, 1.0, %v1674_v6  ;;  %414 = vmatpush.bf16.msrb.mxu0 %v1511_v4  ;;  %310 = vmatpush.bf16.msra.mxu1 %v1517_v15  ;;  %v567_v21 = vsel %vm566_vm3, 1.0, %v1674_v6  ;;  %v1532_v37 = vld [vmem:[%s1992_s1 + $0xa0] sm:$0xff]  ;;  %v1538_v43 = vld [vmem:[%s1992_s1 + $0xd0] sm:$0xff]  ;;  %v1537_v47 = vld [vmem:[%s1992_s1 + $0xc8] sm:$0xff] }
  0x1d   : > { %v1758_v8 = vpack.c.bf16 %v233_v7, %v233_v7  ;;  %347 = vmatpush.bf16.msra.mxu2 %v1513_v16  ;;  %v1793_v22 = vpack.c.bf16 %v567_v21, %v567_v21  ;;  %v1542_v44 = vld [vmem:[%s1992_s1 + $0xf0] sm:$0xff]  ;;  %v1541_v48 = vld [vmem:[%s1992_s1 + $0xe8] sm:$0xff]  ;;  %v1536_v50 = vld [vmem:[%s1992_s1 + $0xc0] sm:$0xff]  ;;  %p1634_p3 = pnand %p1633_p2, %p1629_p13 }
  0x1e   : > { %393 = vmatpush.bf16.msra.mxu3 %v1521_v17  ;;  %v1546_v45 = vld [vmem:[%s1992_s1 + $0x110] sm:$0xff]  ;;  %v1545_v49 = vld [vmem:[%s1992_s1 + $0x108] sm:$0xff]  ;;  %v1540_v51 = vld [vmem:[%s1992_s1 + $0xe0] sm:$0xff] }
  0x1f   : > { %1170 = vmatmul.msk.bf16.vlgmr.msra.gmra.mxu0 %vm241_vm1, %v1758_v8  ;;  %v1544_v52 = vld [vmem:[%s1992_s1 + $0x100] sm:$0xff] }
  0x20   : > { %579 = vmatpush.bf16.msra.mxu0 %v1511_v4  ;;  %311 = vmatpush.bf16.msra.mxu1 %v1516_v23  ;;  %v1606_v18 = vld [vmem:[%s1993_s2] ss:$0 sm:$0xff] }
  0x21   : > { %348 = vmatpush.bf16.msra.mxu2 %v1512_v24 }
  0x22   : > { %394 = vmatpush.bf16.msra.mxu3 %v1520_v25 }
  0x24   : > { %461 = vmatpush.bf16.msrb.mxu1 %v1527_v26 }
  0x25   : > { %508 = vmatpush.bf16.msrb.mxu2 %v1531_v27 }
  0x26   : > { %555 = vmatpush.bf16.msrb.mxu3 %v1535_v28 }
  0x28   : > { %462 = vmatpush.bf16.msrb.mxu1 %v1526_v29  ;;  %v1551_v29 = vld [vmem:[%s1994_s3 + $0x18] sm:$0xff] }
  0x29   : > { %509 = vmatpush.bf16.msrb.mxu2 %v1530_v30  ;;  %v1549_v30 = vld [vmem:[%s1994_s3 + $0x8] sm:$0xff] }
  0x2a   : > { %556 = vmatpush.bf16.msrb.mxu3 %v1534_v31  ;;  %v1553_v31 = vld [vmem:[%s1994_s3 + $0x28] sm:$0xff] }
  0x2c   : > { %463 = vmatpush.bf16.msrb.mxu1 %v1525_v32  ;;  %v1548_v32 = vld [vmem:[%s1994_s3] sm:$0xff] }
  0x2d   : > { %510 = vmatpush.bf16.msrb.mxu2 %v1529_v33  ;;  %v1552_v33 = vld [vmem:[%s1994_s3 + $0x20] sm:$0xff] }
  0x2e   : > { %557 = vmatpush.bf16.msrb.mxu3 %v1533_v34  ;;  %v1559_v34 = vld [vmem:[%s1994_s3 + $0x58] sm:$0xff] }
  0x2f   : > { %1238 = vmatmul.msk.bf16.vlgmr.msrb.gmra.mxu0 %vm241_vm1, %v1789_v19 }
  0x30   : > { %464 = vmatpush.bf16.msrb.mxu1 %v1524_v35  ;;  %v1554_v35 = vld [vmem:[%s1994_s3 + $0x30] sm:$0xff] }
  0x31   : > { %511 = vmatpush.bf16.msrb.mxu2 %v1528_v36  ;;  %v1556_v36 = vld [vmem:[%s1994_s3 + $0x40] sm:$0xff] }
  0x32   : > { %558 = vmatpush.bf16.msrb.mxu3 %v1532_v37  ;;  %v1558_v37 = vld [vmem:[%s1994_s3 + $0x50] sm:$0xff] }
  0x3f   : > { %1314 = vmatmul.msk.bf16.vlgmr.msra.gmra.mxu0 %vm241_vm1, %v1793_v22 }
  0x9c   : > { %v254_v38 = vpop.f32.mrf.mxu0 }
  0x9d   : > { %v258_v40 = vpack.c.bf16 %v254_v38, %v254_v38 }
  0x9f   : > { %1195 = vmatmul.msk.bf16.vlgmr.msra.gmra.mxu1 %vm300_vm4, %v258_v40  ;;  %1212 = vmatmul.msk.bf16.vlgmr.msra.gmra.mxu2 %vm300_vm4, %v258_v40 }
  0xa0   : > { %1237 = vmatmul.msk.bf16.vlgmr.msra.gmra.mxu3 %vm300_vm4, %v258_v40  ;;  %626 = vmatpush.bf16.msra.mxu1 %v1539_v39  ;;  %v1561_v39 = vld [vmem:[%s1994_s3 + $0x68] sm:$0xff] }
  0xa1   : > { %673 = vmatpush.bf16.msra.mxu2 %v1543_v41  ;;  %720 = vmatpush.bf16.msra.mxu3 %v1547_v42  ;;  %v1563_v41 = vld [vmem:[%s1994_s3 + $0x78] sm:$0xff]  ;;  %v1565_v42 = vld [vmem:[%s1994_s3 + $0x88] sm:$0xff] }
  0xa4   : > { %v256_v46 = vpop.f32.mrf.mxu0  ;;  %627 = vmatpush.bf16.msra.mxu1 %v1538_v43  ;;  %v1560_v43 = vld [vmem:[%s1994_s3 + $0x60] sm:$0xff] }
  0xa5   : > { %674 = vmatpush.bf16.msra.mxu2 %v1542_v44  ;;  %721 = vmatpush.bf16.msra.mxu3 %v1546_v45  ;;  %v1562_v44 = vld [vmem:[%s1994_s3 + $0x70] sm:$0xff]  ;;  %v1564_v45 = vld [vmem:[%s1994_s3 + $0x80] sm:$0xff] }
  0xa8   : > { %628 = vmatpush.bf16.msra.mxu1 %v1537_v47 }
  0xa9   : > { %675 = vmatpush.bf16.msra.mxu2 %v1541_v48  ;;  %722 = vmatpush.bf16.msra.mxu3 %v1545_v49 }
  0xac   : > { %v416_v53 = vpop.f32.mrf.mxu0  ;;  %629 = vmatpush.bf16.msra.mxu1 %v1536_v50 }
  0xad   : > { %v420_v54 = vpack.c.bf16 %v416_v53, %v416_v53  ;;  %676 = vmatpush.bf16.msra.mxu2 %v1540_v51  ;;  %723 = vmatpush.bf16.msra.mxu3 %v1544_v52 }
  0xaf   : > { %1263 = vmatmul.msk.bf16.vlgmr.msrb.gmra.mxu1 %vm300_vm4, %v420_v54  ;;  %1288 = vmatmul.msk.bf16.vlgmr.msrb.gmra.mxu2 %vm300_vm4, %v420_v54 }
  0xb0   : > { %1313 = vmatmul.msk.bf16.vlgmr.msrb.gmra.mxu3 %vm300_vm4, %v420_v54  ;;  %789 = vmatpush.bf16.msrb.mxu1 %v1551_v29 }
  0xb1   : > { %814 = vmatpush.bf16.msrb.mxu2 %v1549_v30  ;;  %844 = vmatpush.bf16.msrb.mxu3 %v1553_v31 }
  0xb4   : > { %v418_v55 = vpop.f32.mrf.mxu0 }
  0xb5   : > { %815 = vmatpush.bf16.msrb.mxu2 %v1548_v32  ;;  %845 = vmatpush.bf16.msrb.mxu3 %v1552_v33 }
  0xbc   : > { %v581_v56 = vpop.f32.mrf.mxu0 }
  0xbd   : > { %v585_v57 = vpack.c.bf16 %v581_v56, %v581_v56 }
  0xbf   : > { %1339 = vmatmul.msk.bf16.vlgmr.msra.gmra.mxu1 %vm300_vm4, %v585_v57  ;;  %1364 = vmatmul.msk.bf16.vlgmr.msra.gmra.mxu2 %vm300_vm4, %v585_v57 }
  0xc0   : > { %1389 = vmatmul.msk.bf16.vlgmr.msra.gmra.mxu3 %vm300_vm4, %v585_v57 }
  0xc1   : > { %956 = vmatpush.bf16.msra.mxu3 %v1559_v34 }
  0xc4   : > { %v583_v58 = vpop.f32.mrf.mxu0 }
  0xc5   : > { %957 = vmatpush.bf16.msra.mxu3 %v1558_v37 }
 0x11c   : > { %v313_v59 = vpop.f32.mrf.mxu1 }
 0x122   : > { %v350_v60 = vpop.f32.mrf.mxu2 }
 0x123   : > { %v396_v61 = vpop.f32.mrf.mxu3  ;;  %v351_v3 = vadd.f32 %v350_v60, %v313_v59 }
 0x124   : > { %v315_v62 = vpop.f32.mrf.mxu1 }
 0x125   : > { %v400_v6 = vadd.f32 %v396_v61, %v351_v3 }
 0x12a   : > { %v352_v63 = vpop.f32.mrf.mxu2 }
 0x12b   : > { %v398_v0 = vpop.f32.mrf.mxu3 }
 0x12c   : > { %v466_v1 = vpop.f32.mrf.mxu1 }
 0x12d   : > { %v470_v7 = vadd.f32 %v466_v1, %v400_v6 }
 0x132   : > { %v513_v2 = vpop.f32.mrf.mxu2 }
 0x133   : > { %v560_v4 = vpop.f32.mrf.mxu3  ;;  %v517_v10 = vadd.f32 %v513_v2, %v470_v7 }
 0x134   : > { %v468_v5 = vpop.f32.mrf.mxu1 }
 0x135   : > { %v564_v13 = vadd.f32 %v560_v4, %v517_v10 }
 0x13a   : > { %v515_v9 = vpop.f32.mrf.mxu2 }
 0x13b   : > { %v562_v11 = vpop.f32.mrf.mxu3 }
 0x13c   : > { %v631_v12 = vpop.f32.mrf.mxu1 }
 0x13d   : > { %v635_v14 = vadd.f32 %v631_v12, %v564_v13  ;;  %v1607_v12 = vld [vmem:[%s1995_s4] ss:$0 sm:$0xff] }
 0x142   : > { %v678_v15 = vpop.f32.mrf.mxu2 }
 0x143   : > { %v682_v16 = vadd.f32 %v678_v15, %v635_v14  ;;  %v725_v17 = vpop.f32.mrf.mxu3 }
 0x144   : > { %v633_v20 = vpop.f32.mrf.mxu1 }
 0x145   : > { %v729_v21 = vadd.f32 %v725_v17, %v682_v16 }
 0x147   : > { %v734_v23 = vadd.f32 %v1606_v18, %v729_v21 }
 0x149   : > { %v735_v24 = vmax.f32 %v734_v23, 0.0 }
 0x14a   : > { %v680_v25 = vpop.f32.mrf.mxu2 }
 0x14b   : > { %v736_v26 = vpack.c.bf16 %v735_v24, %v735_v24  ;;  %v727_v27 = vpop.f32.mrf.mxu3 }
 0x14d   : > { %v742_v28 = vsel %vm740_vm5, %v736_v26, 0 }
 0x14e   : > { %751 = vmatpush.bf16.msrb.mxu0 %v742_v28 }
 0x151   : > { %1390 = vmatmul.msk.bf16.vlgmr.msrb.gmra.mxu0 %vm737_vm6, %v1758_v8  ;;  %v1550_v8 = vld [vmem:[%s1994_s3 + $0x10] sm:$0xff] }
 0x152   : > { %861 = vmatpush.bf16.msra.mxu0 %v742_v28  ;;  %790 = vmatpush.bf16.msrb.mxu1 %v1550_v8 }
 0x156   : > { %973 = vmatpush.bf16.msrb.mxu0 %v742_v28 }
 0x161   : > { %1426 = vmatmul.msk.bf16.vlgmr.msra.gmra.mxu0 %vm737_vm6, %v1789_v19  ;;  %v1555_v19 = vld [vmem:[%s1994_s3 + $0x38] sm:$0xff] }
 0x162   : > { %894 = vmatpush.bf16.msra.mxu1 %v1555_v19 }
 0x166   : > { %895 = vmatpush.bf16.msra.mxu1 %v1554_v35 }
 0x171   : > { %1466 = vmatmul.msk.bf16.vlgmr.msrb.gmra.mxu0 %vm737_vm6, %v1793_v22  ;;  %v1557_v22 = vld [vmem:[%s1994_s3 + $0x48] sm:$0xff] }
 0x172   : > { %925 = vmatpush.bf16.msra.mxu2 %v1557_v22 }
 0x176   : > { %926 = vmatpush.bf16.msra.mxu2 %v1556_v36 }
 0x1ce   : > { %v753_v38 = vpop.f32.mrf.mxu0 }
 0x1cf   : > { %v757_v40 = vpack.c.bf16 %v753_v38, %v753_v38 }
 0x1d1   : > { %1403 = vmatmul.msk.bf16.vlgmr.msrb.gmra.mxu1 %vm779_vm7, %v757_v40  ;;  %1412 = vmatmul.msk.bf16.vlgmr.msrb.gmra.mxu2 %vm779_vm7, %v757_v40 }
 0x1d2   : > { %1425 = vmatmul.msk.bf16.vlgmr.msrb.gmra.mxu3 %vm779_vm7, %v757_v40  ;;  %1006 = vmatpush.bf16.msrb.mxu1 %v1561_v39 }
 0x1d3   : > { %1037 = vmatpush.bf16.msrb.mxu2 %v1563_v41  ;;  %1068 = vmatpush.bf16.msrb.mxu3 %v1565_v42 }
 0x1d6   : > { %v755_v46 = vpop.f32.mrf.mxu0  ;;  %1007 = vmatpush.bf16.msrb.mxu1 %v1560_v43 }
 0x1d7   : > { %1038 = vmatpush.bf16.msrb.mxu2 %v1562_v44  ;;  %1069 = vmatpush.bf16.msrb.mxu3 %v1564_v45 }
 0x1de   : > { %v863_v47 = vpop.f32.mrf.mxu0 }
 0x1df   : > { %v867_v48 = vpack.c.bf16 %v863_v47, %v863_v47 }
 0x1e1   : > { %1439 = vmatmul.msk.bf16.vlgmr.msra.gmra.mxu1 %vm779_vm7, %v867_v48  ;;  %1452 = vmatmul.msk.bf16.vlgmr.msra.gmra.mxu2 %vm779_vm7, %v867_v48 }
 0x1e2   : > { %1465 = vmatmul.msk.bf16.vlgmr.msra.gmra.mxu3 %vm779_vm7, %v867_v48 }
 0x1e6   : > { %v865_v49 = vpop.f32.mrf.mxu0 }
 0x1ee   : > { %v975_v50 = vpop.f32.mrf.mxu0 }
 0x1ef   : > { %v979_v51 = vpack.c.bf16 %v975_v50, %v975_v50 }
 0x1f1   : > { %1479 = vmatmul.msk.bf16.vlgmr.msrb.gmra.mxu1 %vm779_vm7, %v979_v51  ;;  %1492 = vmatmul.msk.bf16.vlgmr.msrb.gmra.mxu2 %vm779_vm7, %v979_v51 }
 0x1f2   : > { %1505 = vmatmul.msk.bf16.vlgmr.msrb.gmra.mxu3 %vm779_vm7, %v979_v51 }
 0x1f6   : > { %v977_v52 = vpop.f32.mrf.mxu0 }
 0x24e   : > { %v792_v53 = vpop.f32.mrf.mxu1 }
 0x254   : > { %v817_v54 = vpop.f32.mrf.mxu2 }
 0x255   : > { %v847_v55 = vpop.f32.mrf.mxu3  ;;  %v818_v61 = vadd.f32 %v817_v54, %v792_v53 }
 0x256   : > { %v794_v56 = vpop.f32.mrf.mxu1 }
 0x257   : > { %v851_v0 = vadd.f32 %v847_v55, %v818_v61 }
 0x25c   : > { %v819_v57 = vpop.f32.mrf.mxu2 }
 0x25d   : > { %v849_v58 = vpop.f32.mrf.mxu3 }
 0x25e   : > { %v897_v59 = vpop.f32.mrf.mxu1 }
 0x25f   : > { %v901_v1 = vadd.f32 %v897_v59, %v851_v0 }
 0x264   : > { %v928_v60 = vpop.f32.mrf.mxu2 }
 0x265   : > { %v959_v62 = vpop.f32.mrf.mxu3  ;;  %v932_v3 = vadd.f32 %v928_v60, %v901_v1 }
 0x266   : > { %v899_v63 = vpop.f32.mrf.mxu1 }
 0x267   : > { %v963_v6 = vadd.f32 %v959_v62, %v932_v3 }
 0x26c   : > { %v930_v2 = vpop.f32.mrf.mxu2 }
 0x26d   : > { %v961_v4 = vpop.f32.mrf.mxu3 }
 0x26e   : > { %v1009_v5 = vpop.f32.mrf.mxu1 }
 0x26f   : > { %v1013_v7 = vadd.f32 %v1009_v5, %v963_v6 }
 0x274   : > { %v1040_v9 = vpop.f32.mrf.mxu2 }
 0x275   : > { %v1044_v10 = vadd.f32 %v1040_v9, %v1013_v7  ;;  %v1071_v11 = vpop.f32.mrf.mxu3 }
 0x276   : > { %v1011_v13 = vpop.f32.mrf.mxu1 }
 0x277   : > { %v1075_v14 = vadd.f32 %v1071_v11, %v1044_v10 }
 0x279   : > { %v1080_v15 = vadd.f32 %v1607_v12, %v1075_v14 }
 0x27b   : > { %1608 = vtanh.f32 %v1080_v15 }
 0x27c   : > { %v1042_v16 = vpop.f32.mrf.mxu2 }
 0x27d   : > { %v1073_v17 = vpop.f32.mrf.mxu3 }
 0x281   : > { %v1609_v18 = vpop.eup %1608 }
 0x282   : > { %1083 = vst.msk [vmem:[%s217_s16] sm:$0xf] %vm1082_vm8, %v1609_v18 }
 0x283   : > { %1637 = shalt.err (!%p1634_p3)
}
 0x284   : > { %1566 = dma.vmem_to_hbm [thread:$0]  (%p1743_p5), %s1098_s17, 64, %s1100_s23, %s1085_s25  }
 0x285 PF: > { %p1572_p4 = scmp.ge.s32.totalorder %s1672_s21, 2  ;;  %s1111_s8 = sand.u32 1, %s1660_s18  }
 0x286   : > { %s1112_s11 = scalar_lea.sflag [#allocation3], %s1111_s8 }
 0x287   : > { %p1569_p7 = pnand %p1572_p4, %p1747_p6 }
 0x289   : > { %p1570_p8 = pneg %p1569_p7 }
 0x28b   : > { %1655 = dma.done.wait (%p1570_p8), %s1112_s11, 64  }
 0x28c   : > { %1657 = vsyncadd (%p1570_p8), %s1112_s11, 4294967232  ;;  %p15_p9 = scmp.ge.s32.totalorder %s1730_s24, 4   ;;  %s1999_s18 = smov %s1664_s19 }
 0x28d   : > { %s2000_s19 = smov %s1668_s20  ;;  %s2001_s20 = smov %s1741_s27 }
 0x28e   : > { %s2002_s21 = smov %s1730_s24  ;;  %17 = sbr.rel (!%p15_p9) target bundleno = 3 (0x3), region = 91 }
 0x293   :  { %1118 = vsyncpa [#allocation3], 1 }
 0x294   :  { %1120 = vsyncpa [#allocation3 + $0x1], 1 }

</bundles_post_ra>
